<compile_context>
chip_gen: v6e
topology: v6e:2x2x1
jax: 0.10.0
libtpu: 0.0.40
codegen_flags: <defaults>
</compile_context>

<pallas_src>
import math
import numpy as np
import jax
import jax.numpy as jnp
from jax import lax
from jax.experimental import pallas as pl
from jax.experimental.pallas import tpu as pltpu

TEMPERATURE = 0.07


# ----------------------------- Pallas kernel --------------------------------

def supcon_kernel(labels_ref, mot_ref, au_ref, ex_ref, out_ref):
    # labels_ref: SMEM (B,)              int32 (scalar-prefetched)
    # mot_ref:    VMEM (1, 1, D)         f32   (only the selected row was DMA'd)
    # au_ref:     VMEM (N_AU, D)         f32
    # ex_ref:     VMEM (NUM_EX, 1, N_AU) f32
    # out_ref:    VMEM (1, 1)            f32
    B = labels_ref.shape[0]
    inv_t = 1.0 / TEMPERATURE

    # Scalar-unit search for the LAST sample with a nonzero label (the original
    # PyTorch loop overwrites `loss`, so only the last such sample survives).
    # NOTE: if no label is nonzero the PyTorch module would raise; here we fall
    # back to sample 0.  B is static & tiny, so this unrolls to scalar selects.
    sel = jnp.int32(0)
    for i in range(B):
        sel = jnp.where(labels_ref[i] != 0, jnp.int32(i), sel)
    label = labels_ref[sel]

    mot_row = mot_ref[0]                          # (1, D)   — already the selected row
    ex_row = ex_ref[label]                        # (1, N_AU) AU-indicator row for this label
    mask = (ex_row != 0.0).astype(jnp.float32)    # 1.0 where positive AU

    # One tiny MXU matmul; rhs contraction on dim 1 => no transpose of au.
    dots = lax.dot_general(
        mot_row, au_ref[...],
        dimension_numbers=(((1,), (1,)), ((), ())),
        preferred_element_type=jnp.float32) * inv_t          # (1, N_AU)

    pos_sum = jnp.sum(mask * dots, axis=-1, keepdims=True)                   # (1, 1)
    num_pos = jnp.sum(mask, axis=-1, keepdims=True)                          # (1, 1)
    # No LSE max-subtraction: matches reference exactly; safe for L2-normalized feats.
    neg_sum = jnp.sum((1.0 - mask) * jnp.exp(dots), axis=-1, keepdims=True)  # (1, 1)
    denom = jnp.log(neg_sum)                                                 # (1, 1)

    per = (pos_sum - num_pos * denom) / jnp.maximum(num_pos, 1.0)
    out_ref[...] = per * (1.0 / B)


# ------------------------------ JAX wrapper ----------------------------------

def supcon_loss(labels, mot_feats, au_feats_all, ex_au):
    """labels: (B,) int; mot_feats: (B, D); au_feats_all: (N_AU, D); ex_au: (NUM_EX, N_AU)."""
    B, D = mot_feats.shape
    N_AU, _ = au_feats_all.shape
    NUM_EX = ex_au.shape[0]

    labels_i32 = labels.astype(jnp.int32)
    # Size-1 middle dims so leading-axis selection is block-granular (no
    # sublane-granularity dynamic slicing inside the kernel).
    mot3 = mot_feats.astype(jnp.float32).reshape(B, 1, D)
    au = au_feats_all.astype(jnp.float32)
    ex3 = ex_au.astype(jnp.float32).reshape(NUM_EX, 1, N_AU)

    def _last_nonzero(lbl_ref):
        # Scalar search for the last sample with a nonzero label (see kernel).
        sel = jnp.int32(0)
        for i in range(B):
            sel = jnp.where(lbl_ref[i] != 0, jnp.int32(i), sel)
        return sel

    def mot_map(i, lbl_ref):
        # Data-dependent block index: DMA only the contributing (1, D) row.
        return (_last_nonzero(lbl_ref), 0, 0)

    grid_spec = pltpu.PrefetchScalarGridSpec(
        num_scalar_prefetch=1,
        grid=(1,),
        in_specs=[
            pl.BlockSpec((1, 1, D), mot_map),
            pl.BlockSpec((N_AU, D), lambda i, lbl: (0, 0)),
            pl.BlockSpec((NUM_EX, 1, N_AU), lambda i, lbl: (0, 0, 0)),
        ],
        out_specs=pl.BlockSpec((1, 1), lambda i, lbl: (0, 0)),
    )

    out = pl.pallas_call(
        supcon_kernel,
        out_shape=jax.ShapeDtypeStruct((1, 1), jnp.float32),
        grid_spec=grid_spec,
        compiler_params=pltpu.CompilerParams(dimension_semantics=("arbitrary",)),
        cost_estimate=pl.CostEstimate(
            flops=2 * D * N_AU,
            transcendentals=N_AU + 1,
            bytes_accessed=4 * (D + N_AU * D + NUM_EX * N_AU + B + 1)),
    )(labels_i32, mot3, au, ex3)
    return out[0, 0]


# --------------------------- pure-python reference ---------------------------

def reference_loss(labels, mot_feats, au_feats_all, ex_au, temperature=TEMPERATURE):
    labels = np.asarray(labels)
    mot = np.asarray(mot_feats, dtype=np.float64)
    au = np.asarray(au_feats_all, dtype=np.float64)
    exau = np.asarray(ex_au)
    B = mot.shape[0]
    loss = None
    for i in range(B):
        if labels[i] != 0:
            row = exau[labels[i]]
            pos, neg = [], 0.0
            for j in range(len(row)):
                d = float(np.dot(mot[i], au[j])) / temperature
                if row[j] != 0:
                    pos.append(d)
                else:
                    neg += math.exp(d)
            denom = math.log(neg)
            logits = sum(p - denom for p in pos)
            loss = logits / len(pos)
    return loss / B


# ----------------------------------- main ------------------------------------

if __name__ == "__main__":
    B, D, N_AU, NUM_EX = 4, 32, 12, 8

    # Deterministic stand-in for the ex_au CSV table: values in {0, 1, 2},
    # every row has both zero and nonzero entries.
    # TODO(synk): original module loads this table from a CSV via pandas; synthesized here.
    i_idx = np.arange(NUM_EX)[:, None]
    j_idx = np.arange(N_AU)[None, :]
    ex_au_np = ((i_idx + j_idx) % 3).astype(np.float32)   # (NUM_EX, N_AU)
    ex_au = jnp.asarray(ex_au_np)

    key = jax.random.PRNGKey(0)
    k1, k2 = jax.random.split(key)
    mot_feats = jax.random.normal(k1, (B, D), dtype=jnp.float32)
    au_feats_all = jax.random.normal(k2, (N_AU, D), dtype=jnp.float32)
    # L2-normalize (standard for SupCon features; keeps exp(dot/T) in f32 range).
    mot_feats = mot_feats / jnp.linalg.norm(mot_feats, axis=-1, keepdims=True)
    au_feats_all = au_feats_all / jnp.linalg.norm(au_feats_all, axis=-1, keepdims=True)

    labels = jnp.array([0, 3, 5, 2], dtype=jnp.int32)  # at least one nonzero label

    loss = supcon_loss(labels, mot_feats, au_feats_all, ex_au)
    loss = jax.block_until_ready(loss)

    ref = reference_loss(np.array(labels), np.array(mot_feats), np.array(au_feats_all), ex_au_np)
    assert np.allclose(float(loss), ref, rtol=1e-4, atol=1e-5), (float(loss), ref)

    print("KERNEL_OK")
</pallas_src>

<mosaic_0001>
module attributes {stable_mosaic.version = 11 : i64} {
  func.func @supcon_kernel(%arg0: i32, %arg1: memref<4xi32, #tpu.memory_space<smem>>, %arg2: memref<1x1x32xf32, #tpu.memory_space<vmem>>, %arg3: memref<12x32xf32, #tpu.memory_space<vmem>>, %arg4: memref<8x1x12xf32, #tpu.memory_space<vmem>>, %arg5: memref<1x1xf32, #tpu.memory_space<vmem>>) attributes {dimension_semantics = [#tpu.dimension_semantics<arbitrary>], iteration_bounds = array<i64: 1>, scalar_prefetch = 1 : i64, scratch_operands = 0 : i64, tpu.core_type = #tpu.core_type<tc>, window_params = [{transform_indices = @transform_0, window_bounds = array<i64: 1, 1, 32>}, {pipeline_mode = #tpu.pipeline_mode<synchronous>, transform_indices = @transform_1, window_bounds = array<i64: 12, 32>}, {pipeline_mode = #tpu.pipeline_mode<synchronous>, transform_indices = @transform_2, window_bounds = array<i64: 8, 1, 12>}, {pipeline_mode = #tpu.pipeline_mode<synchronous>, transform_indices = @transform_3, window_bounds = array<i64: 1, 1>}]} {
    %c0 = arith.constant 0 : index
    %0 = memref.load %arg1[%c0] : memref<4xi32, #tpu.memory_space<smem>>
    %c0_i32 = arith.constant 0 : i32
    %1 = arith.cmpi ne, %0, %c0_i32 : i32
    %c0_i32_0 = arith.constant 0 : i32
    %c0_i32_1 = arith.constant 0 : i32
    %2 = arith.select %1, %c0_i32_0, %c0_i32_1 : i32
    %c1 = arith.constant 1 : index
    %3 = memref.load %arg1[%c1] : memref<4xi32, #tpu.memory_space<smem>>
    %c0_i32_2 = arith.constant 0 : i32
    %4 = arith.cmpi ne, %3, %c0_i32_2 : i32
    %c1_i32 = arith.constant 1 : i32
    %5 = arith.select %4, %c1_i32, %2 : i32
    %c2 = arith.constant 2 : index
    %6 = memref.load %arg1[%c2] : memref<4xi32, #tpu.memory_space<smem>>
    %c0_i32_3 = arith.constant 0 : i32
    %7 = arith.cmpi ne, %6, %c0_i32_3 : i32
    %c2_i32 = arith.constant 2 : i32
    %8 = arith.select %7, %c2_i32, %5 : i32
    %c3 = arith.constant 3 : index
    %9 = memref.load %arg1[%c3] : memref<4xi32, #tpu.memory_space<smem>>
    %c0_i32_4 = arith.constant 0 : i32
    %10 = arith.cmpi ne, %9, %c0_i32_4 : i32
    %c3_i32 = arith.constant 3 : i32
    %11 = arith.select %10, %c3_i32, %8 : i32
    %12 = arith.index_cast %11 : i32 to index
    %13 = memref.load %arg1[%12] : memref<4xi32, #tpu.memory_space<smem>>
    %c0_5 = arith.constant 0 : index
    %c0_6 = arith.constant 0 : index
    %c0_7 = arith.constant 0 : index
    %14 = vector.load %arg2[%c0_5, %c0_6, %c0_7] : memref<1x1x32xf32, #tpu.memory_space<vmem>>, vector<1x1x32xf32>
    %15 = vector.shape_cast %14 : vector<1x1x32xf32> to vector<1x32xf32>
    %16 = arith.index_cast %13 : i32 to index
    %c0_8 = arith.constant 0 : index
    %c0_9 = arith.constant 0 : index
    %17 = vector.load %arg4[%16, %c0_8, %c0_9] : memref<8x1x12xf32, #tpu.memory_space<vmem>>, vector<1x1x12xf32>
    %18 = vector.shape_cast %17 : vector<1x1x12xf32> to vector<1x12xf32>
    %cst = arith.constant 0.000000e+00 : f32
    %19 = vector.broadcast %cst : f32 to vector<1x12xf32>
    %20 = arith.cmpf one, %18, %19 : vector<1x12xf32>
    %21 = arith.extui %20 : vector<1x12xi1> to vector<1x12xi32>
    %22 = arith.sitofp %21 : vector<1x12xi32> to vector<1x12xf32>
    %c0_10 = arith.constant 0 : index
    %c0_11 = arith.constant 0 : index
    %23 = vector.load %arg3[%c0_10, %c0_11] : memref<12x32xf32, #tpu.memory_space<vmem>>, vector<12x32xf32>
    %cst_12 = arith.constant dense<0.000000e+00> : vector<1x12xf32>
    %24 = tpu.matmul %15, %23, %cst_12 {dimension_numbers = #tpu.dot_dimension_numbers<[1], [1], [0], [0], [0, 0, 1, 0], [], []>} : vector<1x32xf32>, vector<12x32xf32>, vector<1x12xf32> -> vector<1x12xf32>
    %cst_13 = arith.constant 14.2857141 : f32
    %25 = vector.broadcast %cst_13 : f32 to vector<1x12xf32>
    %26 = arith.mulf %24, %25 : vector<1x12xf32>
    %27 = arith.mulf %22, %26 : vector<1x12xf32>
    %cst_14 = arith.constant dense<0.000000e+00> : vector<1xf32>
    %28 = vector.multi_reduction <add>, %27, %cst_14 [1] : vector<1x12xf32> to vector<1xf32>
    %29 = vector.shape_cast %28 : vector<1xf32> to vector<1x1xf32>
    %cst_15 = arith.constant dense<0.000000e+00> : vector<1xf32>
    %30 = vector.multi_reduction <add>, %22, %cst_15 [1] : vector<1x12xf32> to vector<1xf32>
    %31 = vector.shape_cast %30 : vector<1xf32> to vector<1x1xf32>
    %cst_16 = arith.constant 1.000000e+00 : f32
    %32 = vector.broadcast %cst_16 : f32 to vector<1x12xf32>
    %33 = arith.subf %32, %22 : vector<1x12xf32>
    %34 = math.exp %26 : vector<1x12xf32>
    %35 = arith.mulf %33, %34 : vector<1x12xf32>
    %cst_17 = arith.constant dense<0.000000e+00> : vector<1xf32>
    %36 = vector.multi_reduction <add>, %35, %cst_17 [1] : vector<1x12xf32> to vector<1xf32>
    %37 = vector.shape_cast %36 : vector<1xf32> to vector<1x1xf32>
    %38 = math.log %37 : vector<1x1xf32>
    %39 = arith.mulf %31, %38 : vector<1x1xf32>
    %40 = arith.subf %29, %39 : vector<1x1xf32>
    %cst_18 = arith.constant 1.000000e+00 : f32
    %41 = vector.broadcast %cst_18 : f32 to vector<1x1xf32>
    %42 = arith.maximumf %31, %41 : vector<1x1xf32>
    %43 = arith.divf %40, %42 : vector<1x1xf32>
    %cst_19 = arith.constant 2.500000e-01 : f32
    %44 = vector.broadcast %cst_19 : f32 to vector<1x1xf32>
    %45 = arith.mulf %43, %44 : vector<1x1xf32>
    %c0_20 = arith.constant 0 : index
    %c0_21 = arith.constant 0 : index
    %46 = vector.load %arg5[%c0_20, %c0_21] : memref<1x1xf32, #tpu.memory_space<vmem>>, vector<1x1xf32>
    tpu.vector_store %arg5[%c0_20, %c0_21], %45 {strides = array<i32>} : memref<1x1xf32, #tpu.memory_space<vmem>>, vector<1x1xf32>,
    return
  }
  func.func @transform_0(%arg0: i32, %arg1: memref<4xi32, #tpu.memory_space<smem>>) -> (i32, i32, i32) {
    %c0 = arith.constant 0 : index
    %0 = memref.load %arg1[%c0] : memref<4xi32, #tpu.memory_space<smem>>
    %c0_i32 = arith.constant 0 : i32
    %1 = arith.cmpi ne, %0, %c0_i32 : i32
    %c0_i32_0 = arith.constant 0 : i32
    %c0_i32_1 = arith.constant 0 : i32
    %2 = arith.select %1, %c0_i32_0, %c0_i32_1 : i32
    %c1 = arith.constant 1 : index
    %3 = memref.load %arg1[%c1] : memref<4xi32, #tpu.memory_space<smem>>
    %c0_i32_2 = arith.constant 0 : i32
    %4 = arith.cmpi ne, %3, %c0_i32_2 : i32
    %c1_i32 = arith.constant 1 : i32
    %5 = arith.select %4, %c1_i32, %2 : i32
    %c2 = arith.constant 2 : index
    %6 = memref.load %arg1[%c2] : memref<4xi32, #tpu.memory_space<smem>>
    %c0_i32_3 = arith.constant 0 : i32
    %7 = arith.cmpi ne, %6, %c0_i32_3 : i32
    %c2_i32 = arith.constant 2 : i32
    %8 = arith.select %7, %c2_i32, %5 : i32
    %c3 = arith.constant 3 : index
    %9 = memref.load %arg1[%c3] : memref<4xi32, #tpu.memory_space<smem>>
    %c0_i32_4 = arith.constant 0 : i32
    %10 = arith.cmpi ne, %9, %c0_i32_4 : i32
    %c3_i32 = arith.constant 3 : i32
    %11 = arith.select %10, %c3_i32, %8 : i32
    %c0_i32_5 = arith.constant 0 : i32
    %c0_i32_6 = arith.constant 0 : i32
    %c0_i32_7 = arith.constant 0 : i32
    return %11, %c0_i32_5, %c0_i32_6 : i32, i32, i32
  }
  func.func @transform_1(%arg0: i32, %arg1: memref<4xi32, #tpu.memory_space<smem>>) -> (i32, i32) {
    %c0_i32 = arith.constant 0 : i32
    %c0_i32_0 = arith.constant 0 : i32
    %c0_i32_1 = arith.constant 0 : i32
    return %c0_i32, %c0_i32_0 : i32, i32
  }
  func.func @transform_2(%arg0: i32, %arg1: memref<4xi32, #tpu.memory_space<smem>>) -> (i32, i32, i32) {
    %c0_i32 = arith.constant 0 : i32
    %c0_i32_0 = arith.constant 0 : i32
    %c0_i32_1 = arith.constant 0 : i32
    %c0_i32_2 = arith.constant 0 : i32
    return %c0_i32, %c0_i32_0, %c0_i32_1 : i32, i32, i32
  }
  func.func @transform_3(%arg0: i32, %arg1: memref<4xi32, #tpu.memory_space<smem>>) -> (i32, i32) {
    %c0_i32 = arith.constant 0 : i32
    %c0_i32_0 = arith.constant 0 : i32
    %c0_i32_1 = arith.constant 0 : i32
    return %c0_i32, %c0_i32_0 : i32, i32
  }
}

</mosaic_0001>

<bundles_post_ra>
// kernel: tpu_custom_call.1
= control target key start
LH: loop header
LB: loop body
LE: loop exit
PB: predicated region body
PF: predicated region fallthrough
CT: control target
= control target key end

     0   :  { %s358_s15 = smov [#allocation3]   ;;  %s409_s0 = inlined_call_operand.hbm [shape: s32[4], index: 0, kind: input, shape index: {}]   ;;  %s410_s1 = inlined_call_operand.hbm [shape: f32[4,1,32], index: 1, kind: input, shape index: {}]   ;;  %s411_s2 = inlined_call_operand.hbm [shape: f32[12,32], index: 2, kind: input, shape index: {}]   ;;  %s412_s3 = inlined_call_operand.hbm [shape: f32[8,1,12], index: 3, kind: input, shape index: {}]   ;;  %s413_s4 = inlined_call_operand.hbm [shape: f32[1,1], index: 4, kind: output, shape index: {}]  }
   0x1   :  { %10 = dma.hbm_to_smem %s409_s0, 16, %s358_s15, [#allocation2] }
   0x2   :  { %350 = dma.done.wait [#allocation2], 16 }
   0x3   :  { %351 = vsyncadd [#allocation2], 4294967280 }
   0x4   :  { %12 = sfence }
   0x5   :  { %13 = vsyncpa [#allocation5], 0 }
   0x6   :  { %14 = vsyncpa [#allocation8], 0 }
   0x7   :  { %15 = vsyncpa [#allocation6], 0  ;;  %s359_s18 = smov [#allocation7]   ;;  %s222_s20 = sld [smem:[#allocation3 + $0x1]] }
   0x8   :  { %s42_s19 = sshll.u32 %s359_s18, 4  ;;  %s43_s19 = int_to_ptr.vmem [resolvable:$true] %s42_s19 }
   0x9   :  { %s276_s21 = scalar_lea.vmem %s43_s19, 256  ;;  %p281_p1 = scmp.lt.s32.totalorder %s43_s19, %s43_s19 }
   0xa   :  { %p277_p0 = scmp.ne.s32.totalorder %s43_s19, %s276_s21  ;;  %p282_p2 = scmp.lt.s32.totalorder %s276_s21, %s276_s21 }
   0xc   :  { %p283_p3 = por %p282_p2, %p281_p1 }
   0xe   :  { %p284_p4 = pnand %p283_p3, %p277_p0 }
  0x10   :  { %287 = shalt.err (!%p284_p4)
}
  0x11   :  { %s360_s22 = smov 128   ;;  %s361_s23 = smov 8  }
  0x12   :  { %48 = dma.hbm_to_vmem [thread:$0]  %s411_s2, 256, %s43_s19, [#allocation8], %s360_s22, %s360_s22, %s361_s23  }
  0x13   :  { %s223_s25 = sld [smem:[#allocation3 + $0x2]]  ;;  %s362_s27 = smov [#allocation4]  }
  0x14   :  { %s224_s26 = sld [smem:[#allocation3 + $0x3]]  ;;  %s33_s28 = sshll.u32 %s362_s27, 4  ;;  %s34_s28 = int_to_ptr.vmem [resolvable:$true] %s33_s28 }
  0x15   :  { %s363_s29 = smov [#allocation9]   ;;  %p19_p5 = scmp.ne.s32.totalorder %s222_s20, 0 }
  0x16   :  { %s54_s30 = sshll.u32 %s363_s29, 4  ;;  %s55_s30 = int_to_ptr.vmem [resolvable:$true] %s54_s30 }
  0x17   :  { %s20_s5 = scalar_select %p19_p5, 1, 0 }
  0x18   :  { %s296_s6 = scalar_lea.vmem %s55_s30, 128  ;;  %p301_p9 = scmp.lt.s32.totalorder %s55_s30, %s55_s30 }
  0x19   :  { %p22_p6 = scmp.ne.s32.totalorder %s223_s25, 0  ;;  %p297_p8 = scmp.ne.s32.totalorder %s55_s30, %s296_s6 }
  0x1a   :  { %p25_p7 = scmp.ne.s32.totalorder %s224_s26, 0  ;;  %p302_p10 = scmp.lt.s32.totalorder %s296_s6, %s296_s6 }
  0x1c   :  { %p303_p11 = por %p302_p10, %p301_p9 }
  0x1e   :  { %p304_p12 = pnand %p303_p11, %p297_p8 }
  0x20   :  { %307 = shalt.err (!%p304_p12)
}
  0x21   :  { %s364_s7 = smov 16   ;;  %s365_s2 = smov 1  }
  0x22   :  { %60 = dma.hbm_to_vmem [thread:$0]  %s412_s3, 128, %s55_s30, [#allocation8], %s364_s7, %s364_s7, %s365_s2  }
  0x23   :  { %s415_s5 = smov (%p22_p6, %s20_s5), 2  ;;  %s318_s14 = scalar_lea.vmem %s34_s28, 16 }
  0x24   :  { %s417_s5 = smov (%p25_p7, %s415_s5), 3  ;;  %p319_p13 = scmp.ne.s32.totalorder %s34_s28, %s318_s14 }
  0x25   :  { %s225_s10 = sshll.u32 %s417_s5, 4  ;;  %s322_s15 = scalar_lea.vmem %s34_s28, 32 }
  0x26   :  { %s31_s13 = scalar_lea.hbm %s410_s1, %s225_s10  ;;  %p323_p0 = scmp.lt.s32.totalorder %s34_s28, %s34_s28 }
  0x27   :  { %p324_p1 = scmp.lt.s32.totalorder %s322_s15, %s318_s14 }
  0x29   :  { %p325_p2 = por %p324_p1, %p323_p0 }
  0x2b   :  { %p326_p3 = pnand %p325_p2, %p319_p13 }
  0x2d   :  { %329 = shalt.err (!%p326_p3)
}
  0x2e   :  { %36 = dma.hbm_to_vmem [thread:$0]  %s31_s13, 16, %s34_s28, [#allocation5]  }
  0x2f   :  { %352 = dma.done.wait [#allocation5], 16  }
  0x30   :  { %353 = vsyncadd [#allocation5], 4294967280 }
  0x31   :  { %354 = dma.done.wait [#allocation8], 384  }
  0x32   :  { %355 = vsyncadd [#allocation8], 4294966912  ;;  %v366_v0 = vmov 0.0   ;;  %vm367_vm0 = vmmov 0   ;;  %vm97_vm1 = vcmask 261120   ;;  %v95_v2 = vld [vmem:[#allocation7] sm:$0xff] }
  0x33   :  { %236 = vmatprep.subr.mxu0 %v366_v0  ;;  %240 = vmatprep.mubr.msk.f32.mxu0 %vm367_vm0, %v366_v0  ;;  %v96_v1 = vld [vmem:[#allocation7 + $0x8] sm:$0xf]  ;;  %v89_v3 = vld [vmem:[#allocation4] sm:$0x1]  ;;  %s226_s1 = sld [smem:[#allocation3 + $0x1]]  ;;  %vm179_vm3 = vcmask 90112  }
  0x34   :  { %237 = vmatpush3.xpose.msk.msra.mxu0 %vm97_vm1, %v96_v1  ;;  %s227_s3 = sld [smem:[#allocation3 + $0x2]]  ;;  %s368_s20 = smov [#allocation10]   ;;  %vm201_vm4 = vcmask 0  }
  0x35   :  { %238 = vmatprep.subr.mxu0 %v366_v0  ;;  %s228_s16 = sld [smem:[#allocation3 + $0x3]]  ;;  %s209_s21 = sshll.u32 %s368_s20, 4  ;;  %s210_s21 = int_to_ptr.vmem [resolvable:$true] %s209_s21 }
  0x36   :  { %s330_s22 = scalar_lea.vmem %s210_s21, 16  ;;  %s334_s23 = scalar_lea.vmem %s210_s21, 32 }
  0x37   :  { %p331_p7 = scmp.ne.s32.totalorder %s210_s21, %s330_s22  ;;  %p335_p8 = scmp.lt.s32.totalorder %s210_s21, %s210_s21 }
  0x38   :  { %239 = vmatpush3.xpose.msk.msra.mxu0 %vm97_vm1, %v95_v2  ;;  %p336_p9 = scmp.lt.s32.totalorder %s334_s23, %s330_s22 }
  0x39   :  { %p80_p4 = scmp.ne.s32.totalorder %s226_s1, 0 }
  0x3a   :  { %p83_p5 = scmp.ne.s32.totalorder %s227_s3, 0  ;;  %p337_p10 = por %p336_p9, %p335_p8 }
  0x3b   :  { %241 = vmatmul.mubr.msk.f32.vlgmr.msra.gmra.mxu0 %vm97_vm1, %v89_v3  ;;  %s81_s17 = scalar_select %p80_p4, 1, 0 }
  0x3c   :  { %p86_p6 = scmp.ne.s32.totalorder %s228_s16, 0  ;;  %p338_p11 = pnand %p337_p10, %p331_p7 }
  0x3d   :  { %s419_s17 = smov (%p83_p5, %s81_s17), 2 }
  0x3e   :  { %s421_s17 = smov (%p86_p6, %s419_s17), 3 }
  0x3f   :  { %s88_s18 = sld [smem:[#allocation3 + %s421_s17]] }
  0x45   :  { %s90_s19 = scalar_lea.vmem [#allocation9], %s88_s18 }
  0x46   :  { %v91_v4 = vld [vmem:[%s90_s19] sm:$0x1] }
  0x47   :  { %vm92_vm2 = vcmp.ne.f32.partialorder %v91_v4, 0.0 }
  0x48   :  { %v229_v6 = vsel %vm92_vm2, 1.0, %v366_v0 }
  0x49   :  { %v186_v12 = vsub.f32 1.0, %v229_v6  ;;  %v183_v16 = vsel %vm179_vm3, %v229_v6, 0.0 }
  0xfb   :  { %v173_v5 = vpop.f32.mrf.mxu0 }
  0xfc   :  { %v177_v7 = vmul.f32 14.285714, %v173_v5 }
  0xfd   :  { %v242_v8 = vpop.f32.mrf.mxu0 }
  0xfe   :  { %v187_v9 = vmul.f32 1.442695, %v177_v7  ;;  %v178_v10 = vmul.f32 %v229_v6, %v177_v7 }
 0x100   :  { %254 = vpow2.f32 %v187_v9  ;;  %v180_v11 = vsel %vm179_vm3, %v178_v10, 0.0 }
 0x101   :  { %181 = vadd.xlane.f32.xlu1 %v180_v11 }
 0x10d   :  { %v255_v13 = vpop.eup %254 }
 0x10e   :  { %v189_v14 = vmul.f32 %v255_v13, %v186_v12 }
 0x110   :  { %v190_v15 = vsel %vm179_vm3, %v189_v14, 0.0 }
 0x111   :  { %191 = vadd.xlane.f32.xlu0 %v190_v15 }
 0x115   :  { %184 = vadd.xlane.f32.xlu0 %v183_v16 }
 0x18a   :  { %v182_v23 = vpop.xlane.xlu1 %181 }
 0x19a   :  { %v192_v17 = vpop.xlane.xlu0 %191 }
 0x19b   :  { %256 = vlog2.f32 %v192_v17 }
 0x19e   :  { %v185_v18 = vpop.xlane.xlu0 %184 }
 0x19f   :  { %v197_v19 = vmax.f32 %v185_v18, 1.0 }
 0x1a1   :  { %258 = vrcp.f32 %v197_v19 }
 0x1a8   :  { %v257_v20 = vpop.eup %256 }
 0x1a9   :  { %v194_v21 = vmul.f32 0.6931472, %v257_v20 }
 0x1ab   :  { %v195_v22 = vmul.f32 %v194_v21, %v185_v18 }
 0x1ad   :  { %v196_v24 = vsub.f32 %v182_v23, %v195_v22 }
 0x1ae   :  { %v259_v25 = vpop.eup %258 }
 0x1af   :  { %v199_v26 = vmul.f32 %v259_v25, %v196_v24 }
 0x1b1   :  { %v200_v27 = vmul.f32 0.25, %v199_v26 }
 0x1b3   :  { %202 = vst.msk [vmem:[#allocation10] sm:$0x1] %vm201_vm4, %v200_v27 }
 0x1b4   :  { %341 = shalt.err (!%p338_p11)
}
 0x1b5   :  { %212 = dma.vmem_to_hbm [thread:$0]  %s210_s21, 16, %s413_s4, [#allocation6]  }
 0x1b6   :  { %356 = dma.done.wait [#allocation6], 16  }
 0x1b7   :  { %357 = vsyncadd [#allocation6], 4294967280 }
 0x1b8   :  { %216 = vsyncpa [#allocation5], 1 }
 0x1b9   :  { %217 = vsyncpa [#allocation8], 1 }
 0x1ba   :  { %218 = vsyncpa [#allocation6], 1 }

</bundles_post_ra>
